<compile_context>
chip_gen: v5e
topology: v5e:2x2
jax: 0.10.0
libtpu: 0.0.40
codegen_flags: <defaults>
</compile_context>

<pallas_src>
import jax
import jax.numpy as jnp
from jax.experimental import pallas as pl
from jax.experimental.pallas import tpu as pltpu


def _round_up(x, m):
    return ((x + m - 1) // m) * m


def gcn_kernel(a_ref, x0_ref, w_ref, b_ref, o_ref):
    # a_ref : (Bt, N, N)    adjacency block (Bt graphs)
    # x0_ref: (Bt, N, Kp)   node features, in_dim zero-padded to Kp (x128)
    # w_ref : (Kp, Op)      pre-transposed + zero-padded Linear weight
    # b_ref : (1, Op)       zero-padded Linear bias
    # o_ref : (Bt, N, Op)   lane-dense output block
    bt, n, _ = a_ref.shape
    kp = x0_ref.shape[-1]
    op = w_ref.shape[-1]

    # TODO(synk): Dropout is identity in eval mode; training-mode dropout would
    # use pltpu.prng_seed / pltpu.stateful_bernoulli here.

    # Ax = A @ x0 : batched MXU matmul over the Bt graphs in this block.
    ax = jnp.einsum(
        "bij,bjk->bik", a_ref[...], x0_ref[...],
        preferred_element_type=jnp.float32,
    )

    # Linear: W is shared across the batch, so do one tall-skinny GEMM over all
    # Bt*N rows instead of Bt tiny per-graph matmuls.
    x = jnp.dot(
        ax.reshape(bt * n, kp), w_ref[...],
        preferred_element_type=jnp.float32,
    ) + b_ref[...]

    # x1 = relu(x) - 2 / (x^2 + 1)
    # (pl.reciprocal(..., approx=True) is a free EUP-slot alternative if the
    #  numerical tolerance allows; exact divide kept to hold 1e-4 vs reference.)
    x1 = jnp.maximum(x, 0.0) - 2.0 / (x * x + 1.0)

    o_ref[...] = x1.reshape(bt, n, op)


def gcn_forward(A, x0, weight, bias, *, batch_block=8):
    """A: (B,N,N) f32, x0: (B,N,in_dim) f32, weight: (out_dim,in_dim) torch
    layout, bias: (out_dim,). Returns (B,N,out_dim) f32."""
    B, N, _ = A.shape
    in_dim = x0.shape[-1]
    out_dim = weight.shape[0]

    # Lane-dense padding (multiples of 128) for the contraction and output dims.
    kp = _round_up(in_dim, 128)
    op = _round_up(out_dim, 128)

    x0_p = jnp.pad(x0, ((0, 0), (0, 0), (0, kp - in_dim)))
    # Pre-transpose W to (in_dim, out_dim), then zero-pad to (Kp, Op).
    w_p = jnp.pad(weight.T, ((0, kp - in_dim), (0, op - out_dim)))
    b_p = jnp.pad(bias, (0, op - out_dim)).reshape(1, op)

    # Graphs per grid step: as many as possible (<= batch_block, divides B).
    bt = min(B, batch_block)
    while B % bt != 0:
        bt -= 1
    grid = (B // bt,)

    flops = 2 * B * N * N * kp + 2 * B * N * kp * op
    bytes_accessed = 4 * (A.size + x0_p.size + w_p.size + b_p.size + B * N * op)
    cost = pl.CostEstimate(
        flops=flops, transcendentals=0, bytes_accessed=bytes_accessed
    )

    out_p = pl.pallas_call(
        gcn_kernel,
        out_shape=jax.ShapeDtypeStruct((B, N, op), jnp.float32),
        grid_spec=pltpu.PrefetchScalarGridSpec(
            num_scalar_prefetch=0,
            grid=grid,
            in_specs=[
                pl.BlockSpec((bt, N, N), lambda b: (b, 0, 0)),    # A block
                pl.BlockSpec((bt, N, kp), lambda b: (b, 0, 0)),   # x0 block
                pl.BlockSpec((kp, op), lambda b: (0, 0)),         # W (shared)
                pl.BlockSpec((1, op), lambda b: (0, 0)),          # bias (shared)
            ],
            out_specs=pl.BlockSpec((bt, N, op), lambda b: (b, 0, 0)),
        ),
        compiler_params=pltpu.CompilerParams(
            dimension_semantics=("parallel",),
        ),
        cost_estimate=cost,
    )(A, x0_p, w_p, b_p)

    # Slice away the lane padding.
    return out_p[..., :out_dim]


def reference_forward(A, x0, weight, bias):
    ax = jnp.einsum("bij,bjk->bik", A, x0)
    x = jnp.einsum("bik,ok->bio", ax, weight) + bias
    return jnp.maximum(x, 0.0) - 2.0 / (x * x + 1.0)


if __name__ == "__main__":
    # Small deterministic shapes consistent with the module's forward.
    B, N = 2, 16          # batch of graphs, N nodes each
    in_dim, out_dim = 32, 32

    key = jax.random.PRNGKey(0)
    k_a, k_x, k_w, k_b = jax.random.split(key, 4)

    A = jax.random.uniform(k_a, (B, N, N), dtype=jnp.float32)
    x0 = jax.random.normal(k_x, (B, N, in_dim), dtype=jnp.float32)

    # Deterministic Linear init (torch-style uniform(-1/sqrt(in), 1/sqrt(in))).
    bound = 1.0 / (in_dim ** 0.5)
    weight = jax.random.uniform(k_w, (out_dim, in_dim), dtype=jnp.float32,
                                minval=-bound, maxval=bound)
    bias = jax.random.uniform(k_b, (out_dim,), dtype=jnp.float32,
                              minval=-bound, maxval=bound)

    out = gcn_forward(A, x0, weight, bias)
    out = jax.block_until_ready(out)

    ref = reference_forward(A, x0, weight, bias)
    assert out.shape == (B, N, out_dim)
    assert jnp.allclose(out, ref, atol=1e-4, rtol=1e-4), "mismatch vs reference"

    print("KERNEL_OK")
</pallas_src>

<mosaic_0001>
module attributes {stable_mosaic.version = 11 : i64} {
  func.func @gcn_kernel(%arg0: i32, %arg1: memref<2x16x16xf32, #tpu.memory_space<vmem>>, %arg2: memref<2x16x128xf32, #tpu.memory_space<vmem>>, %arg3: memref<128x128xf32, #tpu.memory_space<vmem>>, %arg4: memref<1x128xf32, #tpu.memory_space<vmem>>, %arg5: memref<2x16x128xf32, #tpu.memory_space<vmem>>) attributes {dimension_semantics = [#tpu.dimension_semantics<parallel>], iteration_bounds = array<i64: 1>, scalar_prefetch = 0 : i64, scratch_operands = 0 : i64, tpu.core_type = #tpu.core_type<tc>, window_params = [{transform_indices = @transform_0, window_bounds = array<i64: 2, 16, 16>}, {transform_indices = @transform_1, window_bounds = array<i64: 2, 16, 128>}, {pipeline_mode = #tpu.pipeline_mode<synchronous>, transform_indices = @transform_2, window_bounds = array<i64: 128, 128>}, {pipeline_mode = #tpu.pipeline_mode<synchronous>, transform_indices = @transform_3, window_bounds = array<i64: 1, 128>}, {transform_indices = @transform_4, window_bounds = array<i64: 2, 16, 128>}]} {
    %c0 = arith.constant 0 : index
    %c0_0 = arith.constant 0 : index
    %c0_1 = arith.constant 0 : index
    %0 = vector.load %arg1[%c0, %c0_0, %c0_1] : memref<2x16x16xf32, #tpu.memory_space<vmem>>, vector<2x16x16xf32>
    %c0_2 = arith.constant 0 : index
    %c0_3 = arith.constant 0 : index
    %c0_4 = arith.constant 0 : index
    %1 = vector.load %arg2[%c0_2, %c0_3, %c0_4] : memref<2x16x128xf32, #tpu.memory_space<vmem>>, vector<2x16x128xf32>
    "tpu.trace_start"() <{level = 10 : i32, message = "bij,bjk->bik"}> : () -> ()
    %cst = arith.constant dense<0.000000e+00> : vector<2x16x128xf32>
    %2 = tpu.matmul %0, %1, %cst {dimension_numbers = #tpu.dot_dimension_numbers<[2], [1], [1], [2], [0, 0, 0, 1, 1, 2], [0], [0]>} : vector<2x16x16xf32>, vector<2x16x128xf32>, vector<2x16x128xf32> -> vector<2x16x128xf32>
    "tpu.trace_stop"() : () -> ()
    %3 = vector.shape_cast %2 : vector<2x16x128xf32> to vector<32x128xf32>
    %c0_5 = arith.constant 0 : index
    %c0_6 = arith.constant 0 : index
    %4 = vector.load %arg3[%c0_5, %c0_6] : memref<128x128xf32, #tpu.memory_space<vmem>>, vector<128x128xf32>
    %cst_7 = arith.constant dense<0.000000e+00> : vector<32x128xf32>
    %5 = tpu.matmul %3, %4, %cst_7 {dimension_numbers = #tpu.dot_dimension_numbers<[1], [0], [0], [1], [0, 0, 1, 1], [], []>} : vector<32x128xf32>, vector<128x128xf32>, vector<32x128xf32> -> vector<32x128xf32>
    %c0_8 = arith.constant 0 : index
    %c0_9 = arith.constant 0 : index
    %6 = vector.load %arg4[%c0_8, %c0_9] : memref<1x128xf32, #tpu.memory_space<vmem>>, vector<1x128xf32>
    %7 = vector.broadcast %6 : vector<1x128xf32> to vector<32x128xf32>
    %8 = arith.addf %5, %7 : vector<32x128xf32>
    %cst_10 = arith.constant 0.000000e+00 : f32
    %9 = vector.broadcast %cst_10 : f32 to vector<32x128xf32>
    %10 = arith.maximumf %8, %9 : vector<32x128xf32>
    %11 = arith.mulf %8, %8 : vector<32x128xf32>
    %cst_11 = arith.constant 1.000000e+00 : f32
    %12 = vector.broadcast %cst_11 : f32 to vector<32x128xf32>
    %13 = arith.addf %11, %12 : vector<32x128xf32>
    %cst_12 = arith.constant 2.000000e+00 : f32
    %14 = vector.broadcast %cst_12 : f32 to vector<32x128xf32>
    %15 = arith.divf %14, %13 : vector<32x128xf32>
    %16 = arith.subf %10, %15 : vector<32x128xf32>
    %17 = vector.shape_cast %16 : vector<32x128xf32> to vector<2x16x128xf32>
    %c0_13 = arith.constant 0 : index
    %c0_14 = arith.constant 0 : index
    %c0_15 = arith.constant 0 : index
    %18 = vector.load %arg5[%c0_13, %c0_14, %c0_15] : memref<2x16x128xf32, #tpu.memory_space<vmem>>, vector<2x16x128xf32>
    tpu.vector_store %arg5[%c0_13, %c0_14, %c0_15], %17 {strides = array<i32>} : memref<2x16x128xf32, #tpu.memory_space<vmem>>, vector<2x16x128xf32>,
    return
  }
  func.func @transform_0(%arg0: i32) -> (i32, i32, i32) {
    %c0_i32 = arith.constant 0 : i32
    %c0_i32_0 = arith.constant 0 : i32
    %c0_i32_1 = arith.constant 0 : i32
    return %arg0, %c0_i32, %c0_i32_0 : i32, i32, i32
  }
  func.func @transform_1(%arg0: i32) -> (i32, i32, i32) {
    %c0_i32 = arith.constant 0 : i32
    %c0_i32_0 = arith.constant 0 : i32
    %c0_i32_1 = arith.constant 0 : i32
    return %arg0, %c0_i32, %c0_i32_0 : i32, i32, i32
  }
  func.func @transform_2(%arg0: i32) -> (i32, i32) {
    %c0_i32 = arith.constant 0 : i32
    %c0_i32_0 = arith.constant 0 : i32
    %c0_i32_1 = arith.constant 0 : i32
    return %c0_i32, %c0_i32_0 : i32, i32
  }
  func.func @transform_3(%arg0: i32) -> (i32, i32) {
    %c0_i32 = arith.constant 0 : i32
    %c0_i32_0 = arith.constant 0 : i32
    %c0_i32_1 = arith.constant 0 : i32
    return %c0_i32, %c0_i32_0 : i32, i32
  }
  func.func @transform_4(%arg0: i32) -> (i32, i32, i32) {
    %c0_i32 = arith.constant 0 : i32
    %c0_i32_0 = arith.constant 0 : i32
    %c0_i32_1 = arith.constant 0 : i32
    return %arg0, %c0_i32, %c0_i32_0 : i32, i32, i32
  }
}

</mosaic_0001>

<bundles_post_ra>
// kernel: tpu_custom_call.1
= control target key start
LH: loop header
LB: loop body
LE: loop exit
PB: predicated region body
PF: predicated region fallthrough
CT: control target
= control target key end

     0   :  { %9 = vsyncpa [#allocation3], 0  ;;  %s528_s0 = inlined_call_operand.hbm [shape: f32[2,16,16], index: 0, kind: input, shape index: {}]   ;;  %s529_s1 = inlined_call_operand.hbm [shape: f32[2,16,128], index: 1, kind: input, shape index: {}]   ;;  %s530_s2 = inlined_call_operand.hbm [shape: f32[128,128], index: 2, kind: input, shape index: {}]   ;;  %s531_s3 = inlined_call_operand.vmem [shape: f32[1,128], index: 3, kind: input, shape index: {}]   ;;  %s532_s4 = inlined_call_operand.hbm [shape: f32[2,16,128], index: 4, kind: output, shape index: {}]  }
   0x1   :  { %10 = vsyncpa [#allocation6], 0 }
   0x2   :  { %11 = vsyncpa [#allocation4], 0  ;;  %s29_s17 = sshll.u32 %s529_s1, 4  ;;  %s450_s18 = smov [#allocation5]   ;;  %s30_s17 = int_to_ptr.hbm [resolvable:$true] %s29_s17 }
   0x3   :  { %s31_s19 = sshll.u32 %s450_s18, 4  ;;  %s16_s22 = sshll.u32 %s528_s0, 4  ;;  %s32_s19 = int_to_ptr.vmem [resolvable:$true] %s31_s19  ;;  %s17_s22 = int_to_ptr.hbm [resolvable:$true] %s16_s22 }
   0x4   :  { %s451_s23 = smov 128   ;;  %s452_s24 = smov 8  }
   0x5   :  { %37 = dma.hbm_to_vmem [thread:$0]  %s30_s17, 512, %s32_s19, [#allocation6], %s451_s23, %s451_s23, %s452_s24  }
   0x6   :  { %s453_s25 = smov [#allocation2]   ;;  %s42_s1 = sshll.u32 %s530_s2, 4  ;;  %s43_s1 = int_to_ptr.hbm [resolvable:$true] %s42_s1 }
   0x7   :  { %s18_s26 = sshll.u32 %s453_s25, 4  ;;  %s454_s0 = smov [#allocation7]   ;;  %s19_s26 = int_to_ptr.vmem [resolvable:$true] %s18_s26 }
   0x8   :  { %24 = dma.hbm_to_vmem [thread:$0]  %s17_s22, 512, %s19_s26, [#allocation3], %s451_s23, %s451_s23, %s452_s24  }
   0x9   :  { %s44_s29 = sshll.u32 %s454_s0, 4  ;;  %s45_s29 = int_to_ptr.vmem [resolvable:$true] %s44_s29 }
   0xa   :  { %50 = dma.hbm_to_vmem [thread:$0]  %s43_s1, 2048, %s45_s29, [#allocation6], %s451_s23, %s451_s23, %s452_s24  }
   0xb   :  { %444 = dma.done.wait [#allocation3], 512  }
   0xc   :  { %445 = vsyncadd [#allocation3], 4294966784 }
   0xd   :  { %446 = dma.done.wait [#allocation6], 2560  }
   0xe   :  { %447 = vsyncadd [#allocation6], 4294964736  ;;  %v70_v0 = vld [vmem:[#allocation5 + $0x8] sm:$0xff]  ;;  %v72_v1 = vld [vmem:[#allocation5 + $0x18] sm:$0xff]  ;;  %vm73_vm0 = vcmask 130048   ;;  %s267_s8 = sshll.u32 %s532_s4, 4  ;;  %s268_s8 = int_to_ptr.hbm [resolvable:$true] %s267_s8 }
   0xf   :  { %v69_v2 = vld [vmem:[#allocation5] sm:$0xff]  ;;  %94 = vmatpush.msra.mxu0 %v70_v0  ;;  %123 = vmatpush.msra.mxu1 %v72_v1  ;;  %v71_v3 = vld [vmem:[#allocation5 + $0x10] sm:$0xff]  ;;  %v147_v6 = vld [vmem:[#allocation7 + $0x78] sm:$0xff] }
  0x10   :  { %v65_v4 = vld [vmem:[#allocation2] sm:$0xff]  ;;  %v67_v5 = vld [vmem:[#allocation2 + $0x10] sm:$0xff]  ;;  %286 = vmatpush.msra.mxu2 %v147_v6  ;;  %v145_v8 = vld [vmem:[#allocation7 + $0x68] sm:$0xff]  ;;  %287 = vmatpush.msra.mxu3 %v147_v6 }
  0x11   :  { %95 = vmatpush.msra.mxu0 %v69_v2  ;;  %124 = vmatpush.msra.mxu1 %v71_v3  ;;  %v146_v7 = vld [vmem:[#allocation7 + $0x70] sm:$0xff]  ;;  %v144_v9 = vld [vmem:[#allocation7 + $0x60] sm:$0xff]  ;;  %v66_v10 = vld [vmem:[#allocation2 + $0x8] sm:$0xff] }
  0x12   :  { %281 = vmatmul.msk.f32.vlgmr.msra.gmra.mxu0 %vm73_vm0, %v65_v4  ;;  %283 = vmatmul.msk.f32.vlgmr.msra.gmra.mxu1 %vm73_vm0, %v67_v5  ;;  %v68_v11 = vld [vmem:[#allocation2 + $0x18] sm:$0xff]  ;;  %v142_v13 = vld [vmem:[#allocation7 + $0x50] sm:$0xff]  ;;  %v141_v14 = vld [vmem:[#allocation7 + $0x48] sm:$0xff] }
  0x13   :  { %152 = vmatpush.msrb.mxu0 %v147_v6  ;;  %285 = vmatpush.msrb.mxu1 %v147_v6  ;;  %v143_v12 = vld [vmem:[#allocation7 + $0x58] sm:$0xff]  ;;  %v140_v15 = vld [vmem:[#allocation7 + $0x40] sm:$0xff]  ;;  %v138_v17 = vld [vmem:[#allocation7 + $0x30] sm:$0xff] }
  0x14   :  { %289 = vmatpush.msra.mxu2 %v146_v7  ;;  %290 = vmatpush.msra.mxu3 %v146_v7  ;;  %v139_v16 = vld [vmem:[#allocation7 + $0x38] sm:$0xff]  ;;  %v137_v18 = vld [vmem:[#allocation7 + $0x28] sm:$0xff]  ;;  %v136_v19 = vld [vmem:[#allocation7 + $0x20] sm:$0xff] }
  0x15   :  { %153 = vmatpush.msrb.mxu0 %v146_v7  ;;  %288 = vmatpush.msrb.mxu1 %v146_v7  ;;  %v135_v20 = vld [vmem:[#allocation7 + $0x18] sm:$0xff]  ;;  %v134_v21 = vld [vmem:[#allocation7 + $0x10] sm:$0xff]  ;;  %v133_v22 = vld [vmem:[#allocation7 + $0x8] sm:$0xff] }
  0x16   :  { %292 = vmatpush.msra.mxu2 %v145_v8  ;;  %293 = vmatpush.msra.mxu3 %v145_v8  ;;  %v132_v23 = vld [vmem:[#allocation7] sm:$0xff] }
  0x17   :  { %154 = vmatpush.msrb.mxu0 %v145_v8  ;;  %291 = vmatpush.msrb.mxu1 %v145_v8  ;;  %v339_v28 = vld [vmem:[%s531_s3] ss:$0 sm:$0xff]  ;;  %s455_s3 = smov [#allocation8]  }
  0x18   :  { %295 = vmatpush.msra.mxu2 %v144_v9  ;;  %296 = vmatpush.msra.mxu3 %v144_v9  ;;  %s265_s5 = sshll.u32 %s455_s3, 4  ;;  %s266_s5 = int_to_ptr.vmem [resolvable:$true] %s265_s5 }
  0x19   :  { %155 = vmatpush.msrb.mxu0 %v144_v9  ;;  %294 = vmatpush.msrb.mxu1 %v144_v9 }
  0x1a   :  { %282 = vmatmul.msk.f32.gmra.mxu0 %vm73_vm0, %v66_v10  ;;  %284 = vmatmul.msk.f32.gmra.mxu1 %vm73_vm0, %v68_v11 }
  0x1b   :  { %156 = vmatpush.msrb.mxu0 %v143_v12  ;;  %298 = vmatpush.msra.mxu2 %v143_v12 }
  0x1c   :  { %297 = vmatpush.msrb.mxu1 %v143_v12  ;;  %299 = vmatpush.msra.mxu3 %v143_v12 }
  0x1d   :  { %157 = vmatpush.msrb.mxu0 %v142_v13  ;;  %301 = vmatpush.msra.mxu2 %v142_v13 }
  0x1e   :  { %300 = vmatpush.msrb.mxu1 %v142_v13  ;;  %302 = vmatpush.msra.mxu3 %v142_v13 }
  0x1f   :  { %158 = vmatpush.msrb.mxu0 %v141_v14  ;;  %304 = vmatpush.msra.mxu2 %v141_v14 }
  0x20   :  { %303 = vmatpush.msrb.mxu1 %v141_v14  ;;  %305 = vmatpush.msra.mxu3 %v141_v14 }
  0x21   :  { %159 = vmatpush.msrb.mxu0 %v140_v15  ;;  %307 = vmatpush.msra.mxu2 %v140_v15 }
  0x22   :  { %306 = vmatpush.msrb.mxu1 %v140_v15  ;;  %308 = vmatpush.msra.mxu3 %v140_v15 }
  0x23   :  { %160 = vmatpush.msrb.mxu0 %v139_v16  ;;  %310 = vmatpush.msra.mxu2 %v139_v16 }
  0x24   :  { %309 = vmatpush.msrb.mxu1 %v139_v16  ;;  %311 = vmatpush.msra.mxu3 %v139_v16 }
  0x25   :  { %161 = vmatpush.msrb.mxu0 %v138_v17  ;;  %313 = vmatpush.msra.mxu2 %v138_v17 }
  0x26   :  { %312 = vmatpush.msrb.mxu1 %v138_v17  ;;  %314 = vmatpush.msra.mxu3 %v138_v17 }
  0x27   :  { %162 = vmatpush.msrb.mxu0 %v137_v18  ;;  %316 = vmatpush.msra.mxu2 %v137_v18 }
  0x28   :  { %315 = vmatpush.msrb.mxu1 %v137_v18  ;;  %317 = vmatpush.msra.mxu3 %v137_v18 }
  0x29   :  { %163 = vmatpush.msrb.mxu0 %v136_v19  ;;  %319 = vmatpush.msra.mxu2 %v136_v19 }
  0x2a   :  { %318 = vmatpush.msrb.mxu1 %v136_v19  ;;  %320 = vmatpush.msra.mxu3 %v136_v19 }
  0x2b   :  { %164 = vmatpush.msrb.mxu0 %v135_v20  ;;  %322 = vmatpush.msra.mxu2 %v135_v20 }
  0x2c   :  { %321 = vmatpush.msrb.mxu1 %v135_v20  ;;  %323 = vmatpush.msra.mxu3 %v135_v20 }
  0x2d   :  { %165 = vmatpush.msrb.mxu0 %v134_v21  ;;  %325 = vmatpush.msra.mxu2 %v134_v21 }
  0x2e   :  { %324 = vmatpush.msrb.mxu1 %v134_v21  ;;  %326 = vmatpush.msra.mxu3 %v134_v21 }
  0x2f   :  { %166 = vmatpush.msrb.mxu0 %v133_v22  ;;  %328 = vmatpush.msra.mxu2 %v133_v22 }
  0x30   :  { %327 = vmatpush.msrb.mxu1 %v133_v22  ;;  %329 = vmatpush.msra.mxu3 %v133_v22 }
  0x31   :  { %167 = vmatpush.msrb.mxu0 %v132_v23  ;;  %331 = vmatpush.msra.mxu2 %v132_v23 }
  0x32   :  { %330 = vmatpush.msrb.mxu1 %v132_v23  ;;  %332 = vmatpush.msra.mxu3 %v132_v23 }
  0x8f   :  { %v97_v24 = vpop.f32.mrf.mxu0  ;;  %v126_v25 = vpop.f32.mrf.mxu1 }
  0x90   :  { %168 = vmatmul.f32.vlgmr.msrb.gmra.mxu0 %v97_v24  ;;  %174 = vmatmul.f32.vlgmr.msra.gmra.mxu2 %v126_v25 }
  0x97   :  { %v100_v26 = vpop.f32.mrf.mxu0  ;;  %v129_v27 = vpop.f32.mrf.mxu1 }
  0x98   :  { %171 = vmatmul.f32.vlgmr.msrb.gmra.mxu1 %v100_v26  ;;  %177 = vmatmul.f32.vlgmr.msra.gmra.mxu3 %v129_v27 }
 0x10d   :  { %v169_v29 = vpop.f32.mrf.mxu0 }
 0x10e   :  { %v170_v30 = vadd.f32 %v339_v28, %v169_v29 }
 0x110   :  { %v185_v31 = vmul.f32 %v170_v30, %v170_v30  ;;  %v181_v58 = vmax.f32 %v170_v30, 0.0 }
 0x112   :  { %v189_v32 = vadd.f32 1.0, %v185_v31 }
 0x113   :  { %v175_v33 = vpop.f32.mrf.mxu2 }
 0x114   :  { %340 = vrcp.f32 %v189_v32  ;;  %v506_v34 = vadd.f32 %v339_v28, %v175_v33  ;;  %v204_v46 = vand.u32 2147483648, %v189_v32  ;;  %vm198_vm1 = vweird.f32 %v189_v32 }
 0x115   :  { %v172_v35 = vpop.f32.mrf.mxu1  ;;  %v202_v48 = vand.u32 2147483647, %v189_v32 }
 0x116   :  { %v508_v36 = vadd.f32 %v339_v28, %v172_v35  ;;  %v187_v37 = vmul.f32 %v506_v34, %v506_v34  ;;  %v205_v53 = vor.u32 1.1754944e-38, %v204_v46  ;;  %v183_v15 = vmax.f32 %v506_v34, 0.0 }
 0x117   :  { %vm203_vm4 = vcmp.eq.f32.partialorder %v202_v48, 8.507059e+37 }
 0x118   :  { %v186_v38 = vmul.f32 %v508_v36, %v508_v36  ;;  %v191_v39 = vadd.f32 1.0, %v187_v37  ;;  %v182_v18 = vmax.f32 %v508_v36, 0.0 }
 0x11a   :  { %v341_v40 = vpop.eup %340  ;;  %v190_v41 = vadd.f32 1.0, %v186_v38  ;;  %342 = vrcp.f32 %v191_v39  ;;  %v232_v62 = vand.u32 2147483647, %v191_v39  ;;  %v234_v63 = vand.u32 2147483648, %v191_v39 }
 0x11b   :  { %v194_v42 = vmul.f32 %v341_v40, %v189_v32  ;;  %v178_v43 = vpop.f32.mrf.mxu3  ;;  %vm199_vm2 = vweird.f32 %v341_v40  ;;  %vm228_vm8 = vweird.f32 %v191_v39 }
 0x11c   :  { %344 = vrcp.f32 %v190_v41  ;;  %v514_v45 = vadd.f32 %v339_v28, %v178_v43  ;;  %vm200_vm3 = vmor %vm198_vm1, %vm199_vm2  ;;  %vm213_vm6 = vweird.f32 %v190_v41  ;;  %v219_v2 = vand.u32 2147483648, %v190_v41 }
 0x11d   :  { %v195_v44 = vsub.f32 1.0, %v194_v42  ;;  %v217_v5 = vand.u32 2147483647, %v190_v41  ;;  %v235_v7 = vor.u32 1.1754944e-38, %v234_v63  ;;  %vm233_vm10 = vcmp.eq.f32.partialorder %v232_v62, 8.507059e+37 }
 0x11e   :  { %v188_v49 = vmul.f32 %v514_v45, %v514_v45  ;;  %v220_v11 = vor.u32 1.1754944e-38, %v219_v2  ;;  %v184_v30 = vmax.f32 %v514_v45, 0.0 }
 0x11f   :  { %v196_v47 = vmul.f32 %v341_v40, %v195_v44  ;;  %vm218_vm12 = vcmp.eq.f32.partialorder %v217_v5, 8.507059e+37 }
 0x120   :  { %v343_v50 = vpop.eup %342  ;;  %v192_v55 = vadd.f32 1.0, %v188_v49 }
 0x121   :  { %v197_v51 = vadd.f32 %v341_v40, %v196_v47  ;;  %v224_v54 = vmul.f32 %v343_v50, %v191_v39  ;;  %vm229_vm5 = vweird.f32 %v343_v50 }
 0x122   :  { %v345_v52 = vpop.eup %344  ;;  %346 = vrcp.f32 %v192_v55  ;;  %vm230_vm9 = vmor %vm228_vm8, %vm229_vm5  ;;  %v249_v22 = vand.u32 2147483648, %v192_v55  ;;  %v247_v25 = vand.u32 2147483647, %v192_v55  ;;  %vm243_vm14 = vweird.f32 %v192_v55 }
 0x123   :  { %v201_v56 = vsel %vm200_vm3, %v341_v40, %v197_v51  ;;  %v209_v57 = vmul.f32 %v345_v52, %v190_v41  ;;  %v225_v60 = vsub.f32 1.0, %v224_v54  ;;  %vm214_vm7 = vweird.f32 %v345_v52 }
 0x124   :  { %v206_v59 = vsel %vm203_vm4, %v205_v53, %v201_v56  ;;  %vm215_vm11 = vmor %vm213_vm6, %vm214_vm7  ;;  %v250_v27 = vor.u32 1.1754944e-38, %v249_v22  ;;  %vm248_vm0 = vcmp.eq.f32.partialorder %v247_v25, 8.507059e+37 }
 0x125   :  { %v207_v61 = vmul.f32 2.0, %v206_v59  ;;  %v210_v0 = vsub.f32 1.0, %v209_v57  ;;  %v226_v1 = vmul.f32 %v343_v50, %v225_v60 }
 0x127   :  { %v253_v3 = vsub.f32 %v181_v58, %v207_v61  ;;  %v211_v4 = vmul.f32 %v345_v52, %v210_v0  ;;  %v227_v6 = vadd.f32 %v343_v50, %v226_v1 }
 0x128   :  { %v347_v9 = vpop.eup %346 }
 0x129   :  { %257 = vst [vmem:[#allocation8] sm:$0xff] %v253_v3  ;;  %v212_v8 = vadd.f32 %v345_v52, %v211_v4  ;;  %v231_v10 = vsel %vm230_vm9, %v343_v50, %v227_v6  ;;  %v239_v14 = vmul.f32 %v347_v9, %v192_v55  ;;  %vm244_vm13 = vweird.f32 %v347_v9 }
 0x12a   :  { %v236_v12 = vsel %vm233_vm10, %v235_v7, %v231_v10  ;;  %vm245_vm15 = vmor %vm243_vm14, %vm244_vm13 }
 0x12b   :  { %v216_v13 = vsel %vm215_vm11, %v345_v52, %v212_v8  ;;  %v237_v16 = vmul.f32 2.0, %v236_v12  ;;  %v240_v20 = vsub.f32 1.0, %v239_v14 }
 0x12c   :  { %v221_v17 = vsel %vm218_vm12, %v220_v11, %v216_v13 }
 0x12d   :  { %v222_v19 = vmul.f32 2.0, %v221_v17  ;;  %v255_v21 = vsub.f32 %v183_v15, %v237_v16  ;;  %v241_v24 = vmul.f32 %v347_v9, %v240_v20 }
 0x12f   :  { %v254_v23 = vsub.f32 %v182_v18, %v222_v19  ;;  %259 = vst [vmem:[#allocation8 + $0x10] sm:$0xff] %v255_v21  ;;  %v242_v26 = vadd.f32 %v347_v9, %v241_v24 }
 0x131   :  { %258 = vst [vmem:[#allocation8 + $0x8] sm:$0xff] %v254_v23  ;;  %v246_v28 = vsel %vm245_vm15, %v347_v9, %v242_v26 }
 0x132   :  { %v251_v29 = vsel %vm248_vm0, %v250_v27, %v246_v28 }
 0x133   :  { %v252_v31 = vmul.f32 2.0, %v251_v29 }
 0x135   :  { %v256_v32 = vsub.f32 %v184_v30, %v252_v31 }
 0x137   :  { %260 = vst [vmem:[#allocation8 + $0x18] sm:$0xff] %v256_v32 }
 0x138   :  { %273 = dma.vmem_to_hbm [thread:$0]  %s266_s5, 512, %s268_s8, [#allocation4], %s451_s23, %s451_s23, %s452_s24  }
 0x139   :  { %448 = dma.done.wait [#allocation4], 512  }
 0x13a   :  { %449 = vsyncadd [#allocation4], 4294966784 }
 0x13b   :  { %278 = vsyncpa [#allocation3], 1 }
 0x13c   :  { %279 = vsyncpa [#allocation6], 1 }
 0x13d   :  { %280 = vsyncpa [#allocation4], 1 }

</bundles_post_ra>
